<compile_context>
chip_gen: v7x
topology: tpu7x:2x2x1
jax: 0.10.0
libtpu: 0.0.40
codegen_flags: <defaults>
</compile_context>

<pallas_src>
import functools

import jax
import jax.numpy as jnp
from jax.experimental import pallas as pl
from jax.experimental.pallas import tpu as pltpu

K = 15          # number of latents kept per sample (top-k by |z|)
LATENT_DIM = 256
_LANE = 128


def _sae_kernel(x_ref, w_ref, benc_ref, bdec_ref, recon_ref, zs_ref, *, k, row_sub):
    """One batch-tile of the sparse autoencoder forward pass.

    x_ref    : (BM, D)  input tile (f32 or bf16)
    w_ref    : (D,  L)  tied encoder/decoder weights (f32 or bf16)
    benc_ref : (1,  L)  f32 encoder bias
    bdec_ref : (1,  D)  f32 decoder bias
    recon_ref: (BM, D)  f32 output reconstruction
    zs_ref   : (BM, L)  f32 output sparse latent code (also used as the dense-z buffer)
    """
    w = w_ref[...]
    benc = benc_ref[...]
    bdec = bdec_ref[...]

    # ---- encode: z = x @ W + b_enc  (MXU, full batch-tile M dim) ----
    z = jnp.dot(x_ref[...], w, preferred_element_type=jnp.float32) + benc
    zs_ref[...] = z           # park dense z; overwritten sub-tile by sub-tile below

    bm, latent = zs_ref.shape
    n_sub = bm // row_sub

    def row_max(a):
        # Fold lane chunks with VPU maximums first, then a single cross-lane
        # (XLU) reduce per vreg-row — keeps the serial k-pass chain short.
        if latent > _LANE and latent % _LANE == 0:
            folded = a[:, :_LANE]
            for c in range(1, latent // _LANE):
                folded = jnp.maximum(folded, a[:, c * _LANE:(c + 1) * _LANE])
            return jnp.max(folded, axis=1, keepdims=True)
        return jnp.max(a, axis=1, keepdims=True)

    # ---- per-sub-tile: exact-k selection fused with the decode matmul ----
    # Fully unrolled (n_sub is a small static count) so the MXU decode of
    # sub-tile s overlaps the XLU top-k chain of sub-tile s+1.
    for s in range(n_sub):
        r0 = s * row_sub                     # static offset
        zt = zs_ref[pl.ds(r0, row_sub), :]
        work = jnp.abs(zt)
        zs_acc = jnp.zeros_like(zt)
        # k passes of (row max -> select -> accumulate -> exclude). Because
        # work = |z| >= 0 and k <= latent, the -1.0 sentinel is never re-picked.
        for _ in range(k):
            m = row_max(work)
            sel = work == m
            zs_acc = jnp.where(sel, zt, zs_acc)
            work = jnp.where(sel, -1.0, work)
        zs_ref[pl.ds(r0, row_sub), :] = zs_acc

        # decode: recon = z_sparse @ W.T + b_dec, contracting against the single
        # resident W on its latent (minor) dim — no transposed weight copy.
        recon = jax.lax.dot_general(
            zs_acc.astype(w.dtype), w,
            dimension_numbers=(((1,), (1,)), ((), ())),
            preferred_element_type=jnp.float32)
        recon_ref[pl.ds(r0, row_sub), :] = (recon + bdec).astype(recon_ref.dtype)


def _pad_to(v, m):
    return -(-v // m) * m


def _vmem_capacity_bytes():
    try:
        info = pltpu.get_tpu_info()
        cap = getattr(info, "vmem_capacity_bytes", None)
        if cap:
            return int(cap)
    except Exception:
        pass
    return 64 * 1024 * 1024          # conservative (v7x per-TC VMEM)


def sparse_autoencoder_forward(x, enc_w, enc_b, dec_b, *, k=K, block_batch=None,
                               use_bf16_matmul=False):
    """x: (B, C, H, W) NCHW  ->  (recon (B, D), z_sparse (B, L))."""
    b = x.shape[0]
    x_flat = x.reshape(b, -1).astype(jnp.float32)      # glue reshape in plain JAX
    d = x_flat.shape[1]
    latent = enc_w.shape[1]
    assert enc_w.shape == (d, latent)
    assert 0 < k <= latent, "top-k requires k <= latent_dim"

    # --- batch tile (MXU M dim). Tiles are <=64 rows or a multiple of 64 so the
    #     top-k sub-tile is always min(bm, 64) rows (never the degenerate 8-row
    #     path). bm=128 keeps v5e's MXU M dim full and still yields >=2 grid
    #     steps for any batch > 128 (v7x dual-TC sharding / pipelining). ---
    b8 = _pad_to(b, 8)
    if block_batch is not None:
        bm = int(block_batch)
        assert bm % 8 == 0, "block_batch must be a multiple of 8"
        if bm > 64:
            assert bm % 64 == 0, "block_batch > 64 must be a multiple of 64"
    elif b8 <= 64:
        bm = b8
    elif b8 <= 128:
        bm = 64       # two grid steps on small-ish batches (helps v7x dual-TC)
    else:
        bm = 128
    b_pad = _pad_to(b8, bm)
    if b_pad != b:
        x_flat = jnp.pad(x_flat, ((0, b_pad - b), (0, 0)))
    grid = (b_pad // bm,)
    row_sub = min(bm, 64)

    w = enc_w.astype(jnp.float32)
    x_in = x_flat
    if use_bf16_matmul:                                 # v6e/v7x MXU fast path (optional)
        w = w.astype(jnp.bfloat16)
        x_in = x_in.astype(jnp.bfloat16)
    benc2 = enc_b.reshape(1, latent).astype(jnp.float32)
    bdec2 = dec_b.reshape(1, d).astype(jnp.float32)

    # Advisory cost estimate for XLA scheduling around the custom call.
    flops = 4 * b_pad * d * latent                      # 2*B*D*L each for encode + decode
    bytes_accessed = (x_in.dtype.itemsize * b_pad * d + w.dtype.itemsize * d * latent
                      + 4 * (latent + d + b_pad * d + b_pad * latent))
    cost = pl.CostEstimate(flops=flops, transcendentals=0, bytes_accessed=bytes_accessed)

    # VMEM budget: double-buffered input/output tiles + single resident weight.
    d_pad = _pad_to(d, _LANE)
    l_pad = _pad_to(latent, _LANE)
    vmem_est = (2 * bm * d_pad * x_in.dtype.itemsize    # x tile
                + 2 * d * l_pad * w.dtype.itemsize      # W (single resident copy, 2 bufs)
                + 2 * 8 * l_pad * 4                     # enc bias (padded tile)
                + 2 * 8 * d_pad * 4                     # dec bias (padded tile)
                + 2 * bm * d_pad * 4                    # recon tile
                + 2 * bm * l_pad * 4)                   # zs tile (doubles as z buffer)
    # Always set the limit; cap at the real chip VMEM (64 MiB on v7x, v5e's
    # default scoped limit is only ~16 MiB so an explicit value avoids OOM there).
    vmem_limit = int(min(max(vmem_est + (4 << 20), 16 << 20), _vmem_capacity_bytes()))

    kernel = functools.partial(_sae_kernel, k=k, row_sub=row_sub)

    recon, z_sparse = pl.pallas_call(
        kernel,
        out_shape=(
            jax.ShapeDtypeStruct((b_pad, d), jnp.float32),
            jax.ShapeDtypeStruct((b_pad, latent), jnp.float32),
        ),
        grid_spec=pltpu.PrefetchScalarGridSpec(
            num_scalar_prefetch=0,
            grid=grid,
            in_specs=[
                pl.BlockSpec((bm, d), lambda i: (i, 0)),        # x_flat tile
                pl.BlockSpec((d, latent), lambda i: (0, 0)),    # W (single resident copy)
                pl.BlockSpec((1, latent), lambda i: (0, 0)),    # encoder bias
                pl.BlockSpec((1, d), lambda i: (0, 0)),         # decoder bias
            ],
            out_specs=[
                pl.BlockSpec((bm, d), lambda i: (i, 0)),
                pl.BlockSpec((bm, latent), lambda i: (i, 0)),
            ],
        ),
        compiler_params=pltpu.CompilerParams(
            dimension_semantics=("parallel",),
            vmem_limit_bytes=vmem_limit,
        ),
        cost_estimate=cost,
    )(x_in, w, benc2, bdec2)

    if b_pad != b:
        recon = recon[:b]
        z_sparse = z_sparse[:b]
    return recon, z_sparse


def _reference_forward(x, enc_w, enc_b, dec_b, k=K):
    """Pure-JAX reference mirroring the PyTorch module."""
    b = x.shape[0]
    x_flat = x.reshape(b, -1)
    z = x_flat @ enc_w + enc_b
    _, idx = jax.lax.top_k(jnp.abs(z), k)
    mask = jnp.zeros_like(z)
    mask = jax.vmap(lambda m, i: m.at[i].set(1.0))(mask, idx)
    z_sparse = z * mask
    recon = z_sparse @ enc_w.T + dec_b
    return recon, z_sparse


if __name__ == "__main__":
    key = jax.random.PRNGKey(0)
    k_x, k_w = jax.random.split(key)

    # Small MNIST-like problem: batch=8, 1x16x16 images -> input_dim=256.
    B, C, H, W = 8, 1, 16, 16
    input_dim = C * H * W
    latent_dim = LATENT_DIM

    x = jax.random.normal(k_x, (B, C, H, W), dtype=jnp.float32)

    # Deterministic parameter init matching the module's __init__:
    #   encoder_weights = randn(input_dim, latent_dim) * 0.1 ; biases = zeros.
    enc_w = jax.random.normal(k_w, (input_dim, latent_dim), dtype=jnp.float32) * 0.1
    enc_b = jnp.zeros((latent_dim,), dtype=jnp.float32)
    dec_b = jnp.zeros((input_dim,), dtype=jnp.float32)

    recon, z_sparse = sparse_autoencoder_forward(x, enc_w, enc_b, dec_b, k=K)
    recon = jax.block_until_ready(recon)
    z_sparse = jax.block_until_ready(z_sparse)

    # Sanity check against the pure-JAX reference.
    recon_expected, zs_expected = _reference_forward(x, enc_w, enc_b, dec_b, k=K)
    assert recon.shape == (B, input_dim) and z_sparse.shape == (B, latent_dim)
    assert jnp.allclose(z_sparse, zs_expected, atol=1e-5, rtol=1e-5)
    assert jnp.allclose(recon, recon_expected, atol=1e-4, rtol=1e-4)
    # exactly k nonzeros per row in the sparse code (holds for tie-free inputs)
    nnz = jnp.sum((z_sparse != 0).astype(jnp.int32), axis=1)
    assert bool(jnp.all(nnz == K))

    print("KERNEL_OK")
</pallas_src>

<mosaic_0001>
module attributes {stable_mosaic.version = 11 : i64} {
  func.func @_sae_kernel(%arg0: i32, %arg1: memref<8x256xf32, #tpu.memory_space<vmem>>, %arg2: memref<256x256xf32, #tpu.memory_space<vmem>>, %arg3: memref<1x256xf32, #tpu.memory_space<vmem>>, %arg4: memref<1x256xf32, #tpu.memory_space<vmem>>, %arg5: memref<8x256xf32, #tpu.memory_space<vmem>>, %arg6: memref<8x256xf32, #tpu.memory_space<vmem>>) attributes {dimension_semantics = [#tpu.dimension_semantics<parallel>], iteration_bounds = array<i64: 1>, scalar_prefetch = 0 : i64, scratch_operands = 0 : i64, tpu.core_type = #tpu.core_type<tc>, window_params = [{transform_indices = @transform_0, window_bounds = array<i64: 8, 256>}, {pipeline_mode = #tpu.pipeline_mode<synchronous>, transform_indices = @transform_1, window_bounds = array<i64: 256, 256>}, {pipeline_mode = #tpu.pipeline_mode<synchronous>, transform_indices = @transform_2, window_bounds = array<i64: 1, 256>}, {pipeline_mode = #tpu.pipeline_mode<synchronous>, transform_indices = @transform_3, window_bounds = array<i64: 1, 256>}, {transform_indices = @transform_4, window_bounds = array<i64: 8, 256>}, {transform_indices = @transform_5, window_bounds = array<i64: 8, 256>}]} {
    %c0 = arith.constant 0 : index
    %c0_0 = arith.constant 0 : index
    %0 = vector.load %arg2[%c0, %c0_0] : memref<256x256xf32, #tpu.memory_space<vmem>>, vector<256x256xf32>
    %c0_1 = arith.constant 0 : index
    %c0_2 = arith.constant 0 : index
    %1 = vector.load %arg3[%c0_1, %c0_2] : memref<1x256xf32, #tpu.memory_space<vmem>>, vector<1x256xf32>
    %c0_3 = arith.constant 0 : index
    %c0_4 = arith.constant 0 : index
    %2 = vector.load %arg4[%c0_3, %c0_4] : memref<1x256xf32, #tpu.memory_space<vmem>>, vector<1x256xf32>
    %c0_5 = arith.constant 0 : index
    %c0_6 = arith.constant 0 : index
    %3 = vector.load %arg1[%c0_5, %c0_6] : memref<8x256xf32, #tpu.memory_space<vmem>>, vector<8x256xf32>
    %cst = arith.constant dense<0.000000e+00> : vector<8x256xf32>
    %4 = tpu.matmul %3, %0, %cst {dimension_numbers = #tpu.dot_dimension_numbers<[1], [0], [0], [1], [0, 0, 1, 1], [], []>} : vector<8x256xf32>, vector<256x256xf32>, vector<8x256xf32> -> vector<8x256xf32>
    %5 = vector.broadcast %1 : vector<1x256xf32> to vector<8x256xf32>
    %6 = arith.addf %4, %5 : vector<8x256xf32>
    %c0_7 = arith.constant 0 : index
    %c0_8 = arith.constant 0 : index
    %7 = vector.load %arg6[%c0_7, %c0_8] : memref<8x256xf32, #tpu.memory_space<vmem>>, vector<8x256xf32>
    tpu.vector_store %arg6[%c0_7, %c0_8], %6 {strides = array<i32>} : memref<8x256xf32, #tpu.memory_space<vmem>>, vector<8x256xf32>,
    %c0_9 = arith.constant 0 : index
    %c0_10 = arith.constant 0 : index
    %8 = vector.load %arg6[%c0_9, %c0_10] : memref<8x256xf32, #tpu.memory_space<vmem>>, vector<8x256xf32>
    %9 = math.absf %8 : vector<8x256xf32>
    %cst_11 = arith.constant 0.000000e+00 : f32
    %10 = vector.broadcast %cst_11 : f32 to vector<8x256xf32>
    %11 = vector.extract_strided_slice %9 {offsets = [0, 0], sizes = [8, 128], strides = [1, 1]} : vector<8x256xf32> to vector<8x128xf32>
    %12 = vector.extract_strided_slice %9 {offsets = [0, 128], sizes = [8, 128], strides = [1, 1]} : vector<8x256xf32> to vector<8x128xf32>
    %13 = arith.maximumf %11, %12 : vector<8x128xf32>
    %cst_12 = arith.constant dense<0xFF800000> : vector<8xf32>
    %14 = vector.multi_reduction <maximumf>, %13, %cst_12 [1] : vector<8x128xf32> to vector<8xf32>
    %15 = vector.shape_cast %14 : vector<8xf32> to vector<8x1xf32>
    %16 = vector.broadcast %15 : vector<8x1xf32> to vector<8x256xf32>
    %17 = arith.cmpf oeq, %9, %16 : vector<8x256xf32>
    %18 = arith.select %17, %8, %10 : vector<8x256xi1>, vector<8x256xf32>
    %cst_13 = arith.constant -1.000000e+00 : f32
    %19 = vector.broadcast %cst_13 : f32 to vector<8x256xf32>
    %20 = arith.select %17, %19, %9 : vector<8x256xi1>, vector<8x256xf32>
    %21 = vector.extract_strided_slice %20 {offsets = [0, 0], sizes = [8, 128], strides = [1, 1]} : vector<8x256xf32> to vector<8x128xf32>
    %22 = vector.extract_strided_slice %20 {offsets = [0, 128], sizes = [8, 128], strides = [1, 1]} : vector<8x256xf32> to vector<8x128xf32>
    %23 = arith.maximumf %21, %22 : vector<8x128xf32>
    %cst_14 = arith.constant dense<0xFF800000> : vector<8xf32>
    %24 = vector.multi_reduction <maximumf>, %23, %cst_14 [1] : vector<8x128xf32> to vector<8xf32>
    %25 = vector.shape_cast %24 : vector<8xf32> to vector<8x1xf32>
    %26 = vector.broadcast %25 : vector<8x1xf32> to vector<8x256xf32>
    %27 = arith.cmpf oeq, %20, %26 : vector<8x256xf32>
    %28 = arith.select %27, %8, %18 : vector<8x256xi1>, vector<8x256xf32>
    %cst_15 = arith.constant -1.000000e+00 : f32
    %29 = vector.broadcast %cst_15 : f32 to vector<8x256xf32>
    %30 = arith.select %27, %29, %20 : vector<8x256xi1>, vector<8x256xf32>
    %31 = vector.extract_strided_slice %30 {offsets = [0, 0], sizes = [8, 128], strides = [1, 1]} : vector<8x256xf32> to vector<8x128xf32>
    %32 = vector.extract_strided_slice %30 {offsets = [0, 128], sizes = [8, 128], strides = [1, 1]} : vector<8x256xf32> to vector<8x128xf32>
    %33 = arith.maximumf %31, %32 : vector<8x128xf32>
    %cst_16 = arith.constant dense<0xFF800000> : vector<8xf32>
    %34 = vector.multi_reduction <maximumf>, %33, %cst_16 [1] : vector<8x128xf32> to vector<8xf32>
    %35 = vector.shape_cast %34 : vector<8xf32> to vector<8x1xf32>
    %36 = vector.broadcast %35 : vector<8x1xf32> to vector<8x256xf32>
    %37 = arith.cmpf oeq, %30, %36 : vector<8x256xf32>
    %38 = arith.select %37, %8, %28 : vector<8x256xi1>, vector<8x256xf32>
    %cst_17 = arith.constant -1.000000e+00 : f32
    %39 = vector.broadcast %cst_17 : f32 to vector<8x256xf32>
    %40 = arith.select %37, %39, %30 : vector<8x256xi1>, vector<8x256xf32>
    %41 = vector.extract_strided_slice %40 {offsets = [0, 0], sizes = [8, 128], strides = [1, 1]} : vector<8x256xf32> to vector<8x128xf32>
    %42 = vector.extract_strided_slice %40 {offsets = [0, 128], sizes = [8, 128], strides = [1, 1]} : vector<8x256xf32> to vector<8x128xf32>
    %43 = arith.maximumf %41, %42 : vector<8x128xf32>
    %cst_18 = arith.constant dense<0xFF800000> : vector<8xf32>
    %44 = vector.multi_reduction <maximumf>, %43, %cst_18 [1] : vector<8x128xf32> to vector<8xf32>
    %45 = vector.shape_cast %44 : vector<8xf32> to vector<8x1xf32>
    %46 = vector.broadcast %45 : vector<8x1xf32> to vector<8x256xf32>
    %47 = arith.cmpf oeq, %40, %46 : vector<8x256xf32>
    %48 = arith.select %47, %8, %38 : vector<8x256xi1>, vector<8x256xf32>
    %cst_19 = arith.constant -1.000000e+00 : f32
    %49 = vector.broadcast %cst_19 : f32 to vector<8x256xf32>
    %50 = arith.select %47, %49, %40 : vector<8x256xi1>, vector<8x256xf32>
    %51 = vector.extract_strided_slice %50 {offsets = [0, 0], sizes = [8, 128], strides = [1, 1]} : vector<8x256xf32> to vector<8x128xf32>
    %52 = vector.extract_strided_slice %50 {offsets = [0, 128], sizes = [8, 128], strides = [1, 1]} : vector<8x256xf32> to vector<8x128xf32>
    %53 = arith.maximumf %51, %52 : vector<8x128xf32>
    %cst_20 = arith.constant dense<0xFF800000> : vector<8xf32>
    %54 = vector.multi_reduction <maximumf>, %53, %cst_20 [1] : vector<8x128xf32> to vector<8xf32>
    %55 = vector.shape_cast %54 : vector<8xf32> to vector<8x1xf32>
    %56 = vector.broadcast %55 : vector<8x1xf32> to vector<8x256xf32>
    %57 = arith.cmpf oeq, %50, %56 : vector<8x256xf32>
    %58 = arith.select %57, %8, %48 : vector<8x256xi1>, vector<8x256xf32>
    %cst_21 = arith.constant -1.000000e+00 : f32
    %59 = vector.broadcast %cst_21 : f32 to vector<8x256xf32>
    %60 = arith.select %57, %59, %50 : vector<8x256xi1>, vector<8x256xf32>
    %61 = vector.extract_strided_slice %60 {offsets = [0, 0], sizes = [8, 128], strides = [1, 1]} : vector<8x256xf32> to vector<8x128xf32>
    %62 = vector.extract_strided_slice %60 {offsets = [0, 128], sizes = [8, 128], strides = [1, 1]} : vector<8x256xf32> to vector<8x128xf32>
    %63 = arith.maximumf %61, %62 : vector<8x128xf32>
    %cst_22 = arith.constant dense<0xFF800000> : vector<8xf32>
    %64 = vector.multi_reduction <maximumf>, %63, %cst_22 [1] : vector<8x128xf32> to vector<8xf32>
    %65 = vector.shape_cast %64 : vector<8xf32> to vector<8x1xf32>
    %66 = vector.broadcast %65 : vector<8x1xf32> to vector<8x256xf32>
    %67 = arith.cmpf oeq, %60, %66 : vector<8x256xf32>
    %68 = arith.select %67, %8, %58 : vector<8x256xi1>, vector<8x256xf32>
    %cst_23 = arith.constant -1.000000e+00 : f32
    %69 = vector.broadcast %cst_23 : f32 to vector<8x256xf32>
    %70 = arith.select %67, %69, %60 : vector<8x256xi1>, vector<8x256xf32>
    %71 = vector.extract_strided_slice %70 {offsets = [0, 0], sizes = [8, 128], strides = [1, 1]} : vector<8x256xf32> to vector<8x128xf32>
    %72 = vector.extract_strided_slice %70 {offsets = [0, 128], sizes = [8, 128], strides = [1, 1]} : vector<8x256xf32> to vector<8x128xf32>
    %73 = arith.maximumf %71, %72 : vector<8x128xf32>
    %cst_24 = arith.constant dense<0xFF800000> : vector<8xf32>
    %74 = vector.multi_reduction <maximumf>, %73, %cst_24 [1] : vector<8x128xf32> to vector<8xf32>
    %75 = vector.shape_cast %74 : vector<8xf32> to vector<8x1xf32>
    %76 = vector.broadcast %75 : vector<8x1xf32> to vector<8x256xf32>
    %77 = arith.cmpf oeq, %70, %76 : vector<8x256xf32>
    %78 = arith.select %77, %8, %68 : vector<8x256xi1>, vector<8x256xf32>
    %cst_25 = arith.constant -1.000000e+00 : f32
    %79 = vector.broadcast %cst_25 : f32 to vector<8x256xf32>
    %80 = arith.select %77, %79, %70 : vector<8x256xi1>, vector<8x256xf32>
    %81 = vector.extract_strided_slice %80 {offsets = [0, 0], sizes = [8, 128], strides = [1, 1]} : vector<8x256xf32> to vector<8x128xf32>
    %82 = vector.extract_strided_slice %80 {offsets = [0, 128], sizes = [8, 128], strides = [1, 1]} : vector<8x256xf32> to vector<8x128xf32>
    %83 = arith.maximumf %81, %82 : vector<8x128xf32>
    %cst_26 = arith.constant dense<0xFF800000> : vector<8xf32>
    %84 = vector.multi_reduction <maximumf>, %83, %cst_26 [1] : vector<8x128xf32> to vector<8xf32>
    %85 = vector.shape_cast %84 : vector<8xf32> to vector<8x1xf32>
    %86 = vector.broadcast %85 : vector<8x1xf32> to vector<8x256xf32>
    %87 = arith.cmpf oeq, %80, %86 : vector<8x256xf32>
    %88 = arith.select %87, %8, %78 : vector<8x256xi1>, vector<8x256xf32>
    %cst_27 = arith.constant -1.000000e+00 : f32
    %89 = vector.broadcast %cst_27 : f32 to vector<8x256xf32>
    %90 = arith.select %87, %89, %80 : vector<8x256xi1>, vector<8x256xf32>
    %91 = vector.extract_strided_slice %90 {offsets = [0, 0], sizes = [8, 128], strides = [1, 1]} : vector<8x256xf32> to vector<8x128xf32>
    %92 = vector.extract_strided_slice %90 {offsets = [0, 128], sizes = [8, 128], strides = [1, 1]} : vector<8x256xf32> to vector<8x128xf32>
    %93 = arith.maximumf %91, %92 : vector<8x128xf32>
    %cst_28 = arith.constant dense<0xFF800000> : vector<8xf32>
    %94 = vector.multi_reduction <maximumf>, %93, %cst_28 [1] : vector<8x128xf32> to vector<8xf32>
    %95 = vector.shape_cast %94 : vector<8xf32> to vector<8x1xf32>
    %96 = vector.broadcast %95 : vector<8x1xf32> to vector<8x256xf32>
    %97 = arith.cmpf oeq, %90, %96 : vector<8x256xf32>
    %98 = arith.select %97, %8, %88 : vector<8x256xi1>, vector<8x256xf32>
    %cst_29 = arith.constant -1.000000e+00 : f32
    %99 = vector.broadcast %cst_29 : f32 to vector<8x256xf32>
    %100 = arith.select %97, %99, %90 : vector<8x256xi1>, vector<8x256xf32>
    %101 = vector.extract_strided_slice %100 {offsets = [0, 0], sizes = [8, 128], strides = [1, 1]} : vector<8x256xf32> to vector<8x128xf32>
    %102 = vector.extract_strided_slice %100 {offsets = [0, 128], sizes = [8, 128], strides = [1, 1]} : vector<8x256xf32> to vector<8x128xf32>
    %103 = arith.maximumf %101, %102 : vector<8x128xf32>
    %cst_30 = arith.constant dense<0xFF800000> : vector<8xf32>
    %104 = vector.multi_reduction <maximumf>, %103, %cst_30 [1] : vector<8x128xf32> to vector<8xf32>
    %105 = vector.shape_cast %104 : vector<8xf32> to vector<8x1xf32>
    %106 = vector.broadcast %105 : vector<8x1xf32> to vector<8x256xf32>
    %107 = arith.cmpf oeq, %100, %106 : vector<8x256xf32>
    %108 = arith.select %107, %8, %98 : vector<8x256xi1>, vector<8x256xf32>
    %cst_31 = arith.constant -1.000000e+00 : f32
    %109 = vector.broadcast %cst_31 : f32 to vector<8x256xf32>
    %110 = arith.select %107, %109, %100 : vector<8x256xi1>, vector<8x256xf32>
    %111 = vector.extract_strided_slice %110 {offsets = [0, 0], sizes = [8, 128], strides = [1, 1]} : vector<8x256xf32> to vector<8x128xf32>
    %112 = vector.extract_strided_slice %110 {offsets = [0, 128], sizes = [8, 128], strides = [1, 1]} : vector<8x256xf32> to vector<8x128xf32>
    %113 = arith.maximumf %111, %112 : vector<8x128xf32>
    %cst_32 = arith.constant dense<0xFF800000> : vector<8xf32>
    %114 = vector.multi_reduction <maximumf>, %113, %cst_32 [1] : vector<8x128xf32> to vector<8xf32>
    %115 = vector.shape_cast %114 : vector<8xf32> to vector<8x1xf32>
    %116 = vector.broadcast %115 : vector<8x1xf32> to vector<8x256xf32>
    %117 = arith.cmpf oeq, %110, %116 : vector<8x256xf32>
    %118 = arith.select %117, %8, %108 : vector<8x256xi1>, vector<8x256xf32>
    %cst_33 = arith.constant -1.000000e+00 : f32
    %119 = vector.broadcast %cst_33 : f32 to vector<8x256xf32>
    %120 = arith.select %117, %119, %110 : vector<8x256xi1>, vector<8x256xf32>
    %121 = vector.extract_strided_slice %120 {offsets = [0, 0], sizes = [8, 128], strides = [1, 1]} : vector<8x256xf32> to vector<8x128xf32>
    %122 = vector.extract_strided_slice %120 {offsets = [0, 128], sizes = [8, 128], strides = [1, 1]} : vector<8x256xf32> to vector<8x128xf32>
    %123 = arith.maximumf %121, %122 : vector<8x128xf32>
    %cst_34 = arith.constant dense<0xFF800000> : vector<8xf32>
    %124 = vector.multi_reduction <maximumf>, %123, %cst_34 [1] : vector<8x128xf32> to vector<8xf32>
    %125 = vector.shape_cast %124 : vector<8xf32> to vector<8x1xf32>
    %126 = vector.broadcast %125 : vector<8x1xf32> to vector<8x256xf32>
    %127 = arith.cmpf oeq, %120, %126 : vector<8x256xf32>
    %128 = arith.select %127, %8, %118 : vector<8x256xi1>, vector<8x256xf32>
    %cst_35 = arith.constant -1.000000e+00 : f32
    %129 = vector.broadcast %cst_35 : f32 to vector<8x256xf32>
    %130 = arith.select %127, %129, %120 : vector<8x256xi1>, vector<8x256xf32>
    %131 = vector.extract_strided_slice %130 {offsets = [0, 0], sizes = [8, 128], strides = [1, 1]} : vector<8x256xf32> to vector<8x128xf32>
    %132 = vector.extract_strided_slice %130 {offsets = [0, 128], sizes = [8, 128], strides = [1, 1]} : vector<8x256xf32> to vector<8x128xf32>
    %133 = arith.maximumf %131, %132 : vector<8x128xf32>
    %cst_36 = arith.constant dense<0xFF800000> : vector<8xf32>
    %134 = vector.multi_reduction <maximumf>, %133, %cst_36 [1] : vector<8x128xf32> to vector<8xf32>
    %135 = vector.shape_cast %134 : vector<8xf32> to vector<8x1xf32>
    %136 = vector.broadcast %135 : vector<8x1xf32> to vector<8x256xf32>
    %137 = arith.cmpf oeq, %130, %136 : vector<8x256xf32>
    %138 = arith.select %137, %8, %128 : vector<8x256xi1>, vector<8x256xf32>
    %cst_37 = arith.constant -1.000000e+00 : f32
    %139 = vector.broadcast %cst_37 : f32 to vector<8x256xf32>
    %140 = arith.select %137, %139, %130 : vector<8x256xi1>, vector<8x256xf32>
    %141 = vector.extract_strided_slice %140 {offsets = [0, 0], sizes = [8, 128], strides = [1, 1]} : vector<8x256xf32> to vector<8x128xf32>
    %142 = vector.extract_strided_slice %140 {offsets = [0, 128], sizes = [8, 128], strides = [1, 1]} : vector<8x256xf32> to vector<8x128xf32>
    %143 = arith.maximumf %141, %142 : vector<8x128xf32>
    %cst_38 = arith.constant dense<0xFF800000> : vector<8xf32>
    %144 = vector.multi_reduction <maximumf>, %143, %cst_38 [1] : vector<8x128xf32> to vector<8xf32>
    %145 = vector.shape_cast %144 : vector<8xf32> to vector<8x1xf32>
    %146 = vector.broadcast %145 : vector<8x1xf32> to vector<8x256xf32>
    %147 = arith.cmpf oeq, %140, %146 : vector<8x256xf32>
    %148 = arith.select %147, %8, %138 : vector<8x256xi1>, vector<8x256xf32>
    %cst_39 = arith.constant -1.000000e+00 : f32
    %149 = vector.broadcast %cst_39 : f32 to vector<8x256xf32>
    %150 = arith.select %147, %149, %140 : vector<8x256xi1>, vector<8x256xf32>
    %151 = vector.extract_strided_slice %150 {offsets = [0, 0], sizes = [8, 128], strides = [1, 1]} : vector<8x256xf32> to vector<8x128xf32>
    %152 = vector.extract_strided_slice %150 {offsets = [0, 128], sizes = [8, 128], strides = [1, 1]} : vector<8x256xf32> to vector<8x128xf32>
    %153 = arith.maximumf %151, %152 : vector<8x128xf32>
    %cst_40 = arith.constant dense<0xFF800000> : vector<8xf32>
    %154 = vector.multi_reduction <maximumf>, %153, %cst_40 [1] : vector<8x128xf32> to vector<8xf32>
    %155 = vector.shape_cast %154 : vector<8xf32> to vector<8x1xf32>
    %156 = vector.broadcast %155 : vector<8x1xf32> to vector<8x256xf32>
    %157 = arith.cmpf oeq, %150, %156 : vector<8x256xf32>
    %158 = arith.select %157, %8, %148 : vector<8x256xi1>, vector<8x256xf32>
    %c0_41 = arith.constant 0 : index
    %c0_42 = arith.constant 0 : index
    %159 = vector.load %arg6[%c0_41, %c0_42] : memref<8x256xf32, #tpu.memory_space<vmem>>, vector<8x256xf32>
    tpu.vector_store %arg6[%c0_41, %c0_42], %158 {strides = array<i32>} : memref<8x256xf32, #tpu.memory_space<vmem>>, vector<8x256xf32>,
    %cst_43 = arith.constant dense<0.000000e+00> : vector<8x256xf32>
    %160 = tpu.matmul %158, %0, %cst_43 {dimension_numbers = #tpu.dot_dimension_numbers<[1], [1], [0], [0], [0, 0, 1, 0], [], []>} : vector<8x256xf32>, vector<256x256xf32>, vector<8x256xf32> -> vector<8x256xf32>
    %161 = vector.broadcast %2 : vector<1x256xf32> to vector<8x256xf32>
    %162 = arith.addf %160, %161 : vector<8x256xf32>
    %c0_44 = arith.constant 0 : index
    %c0_45 = arith.constant 0 : index
    %163 = vector.load %arg5[%c0_44, %c0_45] : memref<8x256xf32, #tpu.memory_space<vmem>>, vector<8x256xf32>
    tpu.vector_store %arg5[%c0_44, %c0_45], %162 {strides = array<i32>} : memref<8x256xf32, #tpu.memory_space<vmem>>, vector<8x256xf32>,
    return
  }
  func.func @transform_0(%arg0: i32) -> (i32, i32) {
    %c0_i32 = arith.constant 0 : i32
    %c0_i32_0 = arith.constant 0 : i32
    return %arg0, %c0_i32 : i32, i32
  }
  func.func @transform_1(%arg0: i32) -> (i32, i32) {
    %c0_i32 = arith.constant 0 : i32
    %c0_i32_0 = arith.constant 0 : i32
    %c0_i32_1 = arith.constant 0 : i32
    return %c0_i32, %c0_i32_0 : i32, i32
  }
  func.func @transform_2(%arg0: i32) -> (i32, i32) {
    %c0_i32 = arith.constant 0 : i32
    %c0_i32_0 = arith.constant 0 : i32
    %c0_i32_1 = arith.constant 0 : i32
    return %c0_i32, %c0_i32_0 : i32, i32
  }
  func.func @transform_3(%arg0: i32) -> (i32, i32) {
    %c0_i32 = arith.constant 0 : i32
    %c0_i32_0 = arith.constant 0 : i32
    %c0_i32_1 = arith.constant 0 : i32
    return %c0_i32, %c0_i32_0 : i32, i32
  }
  func.func @transform_4(%arg0: i32) -> (i32, i32) {
    %c0_i32 = arith.constant 0 : i32
    %c0_i32_0 = arith.constant 0 : i32
    return %arg0, %c0_i32 : i32, i32
  }
  func.func @transform_5(%arg0: i32) -> (i32, i32) {
    %c0_i32 = arith.constant 0 : i32
    %c0_i32_0 = arith.constant 0 : i32
    return %arg0, %c0_i32 : i32, i32
  }
}

</mosaic_0001>

<bundles_post_ra>
// kernel: tpu_custom_call.1
= control target key start
LH: loop header
LB: loop body
LE: loop exit
PB: predicated region body
PF: predicated region fallthrough
CT: control target
= control target key end

     0   :  { %11 = vsyncpa [#allocation3], 0  ;;  %s851_s0 = inlined_call_operand.hbm [shape: f32[8,256], index: 0, kind: input, shape index: {}]   ;;  %s852_s1 = inlined_call_operand.hbm [shape: f32[256,256], index: 1, kind: input, shape index: {}]   ;;  %s853_s2 = inlined_call_operand.vmem [shape: f32[1,256], index: 2, kind: input, shape index: {}]   ;;  %s854_s3 = inlined_call_operand.vmem [shape: f32[1,256], index: 3, kind: input, shape index: {}]   ;;  %s855_s4 = inlined_call_operand.hbm [shape: f32[8,256], index: 4, kind: output, shape index: {0}]   ;;  %s856_s5 = inlined_call_operand.hbm [shape: f32[8,256], index: 5, kind: output, shape index: {1}]  }
   0x1   :  { %12 = vsyncpa [#allocation6], 0 }
   0x2   :  { %13 = vsyncpa [#allocation4], 0 }
   0x3   :  { %14 = vsyncpa [#allocation9], 0  ;;  %s682_s18 = smov [#allocation2]   ;;  %s683_s20 = smov [#allocation5]  }
   0x4   :  { %s21_s19 = sshll.u32 %s682_s18, 4  ;;  %s30_s21 = sshll.u32 %s683_s20, 4  ;;  %s22_s19 = int_to_ptr.vmem [resolvable:$true] %s21_s19  ;;  %s718_s21 = int_to_ptr.vmem [resolvable:$true] %s30_s21 }
   0x5   :  { %s586_s24 = scalar_lea.hbm %s851_s0, 256 }
   0x6   :  { %p587_p0 = scmp.ne.s32.totalorder %s851_s0, %s586_s24  ;;  %p590_p1 = scmp.lt.u32.totalorder %s586_s24, %s851_s0 }
   0x8   :  { %p592_p2 = pnand %p590_p1, %p587_p0 }
   0xa   :  { %595 = shalt.err (!%p592_p2)
}
   0xb   :  { %s596_s29 = scalar_lea.vmem %s22_s19, 256  ;;  %p601_p4 = scmp.lt.s32.totalorder %s22_s19, %s22_s19 }
   0xc   :  { %p597_p3 = scmp.ne.s32.totalorder %s22_s19, %s596_s29  ;;  %p602_p5 = scmp.lt.s32.totalorder %s596_s29, %s596_s29 }
   0xe   :  { %p603_p6 = por %p602_p5, %p601_p4 }
  0x10   :  { %p604_p7 = pnand %p603_p6, %p597_p3 }
  0x12   :  { %607 = shalt.err (!%p604_p7)
}
  0x13   :  { %24 = dma.hbm_to_vmem [thread:$0]  %s851_s0, 256, %s22_s19, [#allocation3]  }
  0x14   :  { %s608_s9 = scalar_lea.hbm %s852_s1, 8192 }
  0x15   :  { %p609_p8 = scmp.ne.s32.totalorder %s852_s1, %s608_s9  ;;  %p612_p9 = scmp.lt.u32.totalorder %s608_s9, %s852_s1 }
  0x17   :  { %p614_p10 = pnand %p612_p9, %p609_p8 }
  0x19   :  { %617 = shalt.err (!%p614_p10)
}
  0x1a   :  { %s618_s14 = scalar_lea.vmem %s718_s21, 8192  ;;  %p623_p12 = scmp.lt.s32.totalorder %s718_s21, %s718_s21 }
  0x1b   :  { %p619_p11 = scmp.ne.s32.totalorder %s718_s21, %s618_s14  ;;  %p624_p13 = scmp.lt.s32.totalorder %s618_s14, %s618_s14 }
  0x1d   :  { %p625_p0 = por %p624_p13, %p623_p12 }
  0x1f   :  { %p626_p1 = pnand %p625_p0, %p619_p11 }
  0x21   :  { %629 = shalt.err (!%p626_p1)
}
  0x22   :  { %s684_s0 = smov 256   ;;  %s685_s15 = smov 16  }
  0x23   :  { %36 = dma.hbm_to_vmem [thread:$0]  %s852_s1, 8192, %s718_s21, [#allocation6], %s684_s0, %s684_s0, %s685_s15  }
  0x24   :  { %674 = dma.done.wait [#allocation3], 256  }
  0x25   :  { %675 = vsyncadd [#allocation3], 4294967040 }
  0x26   :  { %676 = dma.done.wait [#allocation6], 8192  }
  0x27   :  { %677 = vsyncadd [#allocation6], 4294959104  ;;  %v48_v0 = vld [vmem:[#allocation5 + $0x8] sm:$0xff]  ;;  %v50_v1 = vld [vmem:[#allocation5 + $0x18] sm:$0xff] }
  0x28   :  { %v47_v2 = vld [vmem:[#allocation5] sm:$0xff]  ;;  %v452_v3 = vpack.c.bf16 %v50_v1, %v48_v0  ;;  %v49_v4 = vld [vmem:[#allocation5 + $0x10] sm:$0xff]  ;;  %v52_v5 = vld [vmem:[#allocation5 + $0x28] sm:$0xff] }
  0x29   :  { %v54_v6 = vld [vmem:[#allocation5 + $0x38] sm:$0xff]  ;;  %v454_v7 = vpack.c.bf16 %v49_v4, %v47_v2  ;;  %v51_v9 = vld [vmem:[#allocation5 + $0x20] sm:$0xff]  ;;  %v53_v10 = vld [vmem:[#allocation5 + $0x30] sm:$0xff] }
  0x2a   :  { %v456_v8 = vpack.c.bf16 %v54_v6, %v52_v5  ;;  %v56_v11 = vld [vmem:[#allocation5 + $0x48] sm:$0xff]  ;;  %453 = vmatprep.subr.bf16.mxu0 %v452_v3  ;;  %v58_v12 = vld [vmem:[#allocation5 + $0x58] sm:$0xff]  ;;  %517 = vmatprep.subr.bf16.mxu1 %v452_v3  ;;  %v458_v13 = vpack.c.bf16 %v53_v10, %v51_v9  ;;  %v55_v15 = vld [vmem:[#allocation5 + $0x40] sm:$0xff] }
  0x2b   :  { %455 = vmatpush1.bf16.msra.mxu0 %v454_v7  ;;  %519 = vmatpush1.bf16.xpose.msra.mxu1 %v454_v7  ;;  %v460_v14 = vpack.c.bf16 %v58_v12, %v56_v11  ;;  %v57_v16 = vld [vmem:[#allocation5 + $0x50] sm:$0xff]  ;;  %v60_v17 = vld [vmem:[#allocation5 + $0x68] sm:$0xff]  ;;  %v62_v18 = vld [vmem:[#allocation5 + $0x78] sm:$0xff] }
  0x2c   :  { %457 = vmatprep.subr.bf16.mxu0 %v456_v8  ;;  %521 = vmatprep.subr.bf16.mxu1 %v456_v8  ;;  %v462_v19 = vpack.c.bf16 %v57_v16, %v55_v15  ;;  %v464_v20 = vpack.c.bf16 %v62_v18, %v60_v17  ;;  %v59_v21 = vld [vmem:[#allocation5 + $0x60] sm:$0xff]  ;;  %v61_v22 = vld [vmem:[#allocation5 + $0x70] sm:$0xff]  ;;  %v64_v23 = vld [vmem:[#allocation5 + $0x88] sm:$0xff] }
  0x2d   :  { %v66_v24 = vld [vmem:[#allocation5 + $0x98] sm:$0xff]  ;;  %v466_v25 = vpack.c.bf16 %v61_v22, %v59_v21  ;;  %v63_v27 = vld [vmem:[#allocation5 + $0x80] sm:$0xff]  ;;  %v65_v28 = vld [vmem:[#allocation5 + $0x90] sm:$0xff] }
  0x2e   :  { %v468_v26 = vpack.c.bf16 %v66_v24, %v64_v23  ;;  %v68_v29 = vld [vmem:[#allocation5 + $0xa8] sm:$0xff]  ;;  %v70_v30 = vld [vmem:[#allocation5 + $0xb8] sm:$0xff]  ;;  %v470_v31 = vpack.c.bf16 %v65_v28, %v63_v27  ;;  %v67_v33 = vld [vmem:[#allocation5 + $0xa0] sm:$0xff] }
  0x2f   :  { %459 = vmatpush1.bf16.msra.mxu0 %v458_v13  ;;  %v472_v32 = vpack.c.bf16 %v70_v30, %v68_v29  ;;  %v69_v34 = vld [vmem:[#allocation5 + $0xb0] sm:$0xff]  ;;  %v72_v35 = vld [vmem:[#allocation5 + $0xc8] sm:$0xff]  ;;  %v74_v36 = vld [vmem:[#allocation5 + $0xd8] sm:$0xff] }
  0x30   :  { %461 = vmatprep.subr.bf16.mxu0 %v460_v14  ;;  %v474_v37 = vpack.c.bf16 %v69_v34, %v67_v33  ;;  %v476_v38 = vpack.c.bf16 %v74_v36, %v72_v35  ;;  %v71_v39 = vld [vmem:[#allocation5 + $0xc0] sm:$0xff]  ;;  %v73_v40 = vld [vmem:[#allocation5 + $0xd0] sm:$0xff]  ;;  %v114_v41 = vld [vmem:[#allocation2 + $0x8] sm:$0xff]  ;;  %v116_v34 = vlaneseq }
  0x31   :  { %v76_v42 = vld [vmem:[#allocation5 + $0xe8] sm:$0xff]  ;;  %v78_v43 = vld [vmem:[#allocation5 + $0xf8] sm:$0xff]  ;;  %190 = vmatprep.mubr.f32.mxu0 %v114_v41  ;;  %v749_v44 = vpack.c.bf16 %v73_v40, %v71_v39  ;;  %v75_v46 = vld [vmem:[#allocation5 + $0xe0] sm:$0xff] }
  0x32   :  { %v751_v45 = vpack.c.bf16 %v78_v43, %v76_v42  ;;  %v77_v47 = vld [vmem:[#allocation5 + $0xf0] sm:$0xff]  ;;  %v80_v48 = vld [vmem:[#allocation5 + $0x108] sm:$0xff]  ;;  %v82_v49 = vld [vmem:[#allocation5 + $0x118] sm:$0xff]  ;;  %v773_v35 = vshrl.u32 %v116_v34, 7 }
  0x33   :  { %463 = vmatpush1.bf16.msra.mxu0 %v462_v19  ;;  %523 = vmatpush1.bf16.xpose.msra.mxu1 %v458_v13  ;;  %v754_v50 = vpack.c.bf16 %v77_v47, %v75_v46  ;;  %v757_v51 = vpack.c.bf16 %v82_v49, %v80_v48  ;;  %v79_v52 = vld [vmem:[#allocation5 + $0x100] sm:$0xff]  ;;  %v81_v53 = vld [vmem:[#allocation5 + $0x110] sm:$0xff]  ;;  %v84_v54 = vld [vmem:[#allocation5 + $0x128] sm:$0xff] }
  0x34   :  { %465 = vmatprep.subr.bf16.mxu0 %v464_v20  ;;  %525 = vmatprep.subr.bf16.mxu1 %v460_v14  ;;  %v86_v55 = vld [vmem:[#allocation5 + $0x138] sm:$0xff]  ;;  %v760_v56 = vpack.c.bf16 %v81_v53, %v79_v52  ;;  %v83_v58 = vld [vmem:[#allocation5 + $0x120] sm:$0xff]  ;;  %v85_v59 = vld [vmem:[#allocation5 + $0x130] sm:$0xff]  ;;  %v118_v36 = vsub.s32 0, %v773_v35 }
  0x35   :  { %v763_v57 = vpack.c.bf16 %v86_v55, %v84_v54  ;;  %v88_v60 = vld [vmem:[#allocation5 + $0x148] sm:$0xff]  ;;  %v90_v61 = vld [vmem:[#allocation5 + $0x158] sm:$0xff]  ;;  %v490_v62 = vpack.c.bf16 %v85_v59, %v83_v58  ;;  %v87_v0 = vld [vmem:[#allocation5 + $0x140] sm:$0xff] }
  0x36   :  { %v492_v63 = vpack.c.bf16 %v90_v61, %v88_v60  ;;  %v89_v1 = vld [vmem:[#allocation5 + $0x150] sm:$0xff]  ;;  %v92_v2 = vld [vmem:[#allocation5 + $0x168] sm:$0xff]  ;;  %v94_v3 = vld [vmem:[#allocation5 + $0x178] sm:$0xff] }
  0x37   :  { %467 = vmatpush1.bf16.msra.mxu0 %v466_v25  ;;  %v494_v4 = vpack.c.bf16 %v89_v1, %v87_v0  ;;  %v496_v5 = vpack.c.bf16 %v94_v3, %v92_v2  ;;  %v91_v6 = vld [vmem:[#allocation5 + $0x160] sm:$0xff]  ;;  %v93_v7 = vld [vmem:[#allocation5 + $0x170] sm:$0xff]  ;;  %v96_v8 = vld [vmem:[#allocation5 + $0x188] sm:$0xff] }
  0x38   :  { %469 = vmatprep.subr.bf16.mxu0 %v468_v26  ;;  %v98_v9 = vld [vmem:[#allocation5 + $0x198] sm:$0xff]  ;;  %v498_v10 = vpack.c.bf16 %v93_v7, %v91_v6  ;;  %v95_v12 = vld [vmem:[#allocation5 + $0x180] sm:$0xff]  ;;  %v97_v13 = vld [vmem:[#allocation5 + $0x190] sm:$0xff] }
  0x39   :  { %v500_v11 = vpack.c.bf16 %v98_v9, %v96_v8  ;;  %v100_v14 = vld [vmem:[#allocation5 + $0x1a8] sm:$0xff]  ;;  %v102_v15 = vld [vmem:[#allocation5 + $0x1b8] sm:$0xff]  ;;  %v502_v16 = vpack.c.bf16 %v97_v13, %v95_v12  ;;  %v99_v18 = vld [vmem:[#allocation5 + $0x1a0] sm:$0xff] }
  0x3a   :  { %v504_v17 = vpack.c.bf16 %v102_v15, %v100_v14  ;;  %v106_v21 = vld [vmem:[#allocation5 + $0x1d8] sm:$0xff]  ;;  %v103_v24 = vld [vmem:[#allocation5 + $0x1c0] sm:$0xff]  ;;  %v113_v33 = vld [vmem:[#allocation2] sm:$0xff] }
  0x3b   :  { %471 = vmatpush1.bf16.msra.mxu0 %v470_v31  ;;  %527 = vmatpush1.bf16.xpose.msra.mxu1 %v462_v19  ;;  %v101_v19 = vld [vmem:[#allocation5 + $0x1b0] sm:$0xff]  ;;  %v110_v27 = vld [vmem:[#allocation5 + $0x1f8] sm:$0xff]  ;;  %v107_v30 = vld [vmem:[#allocation5 + $0x1e0] sm:$0xff] }
  0x3c   :  { %473 = vmatprep.subr.bf16.mxu0 %v472_v32  ;;  %529 = vmatprep.subr.bf16.mxu1 %v464_v20  ;;  %v104_v20 = vld [vmem:[#allocation5 + $0x1c8] sm:$0xff]  ;;  %v506_v22 = vpack.c.bf16 %v101_v19, %v99_v18 }
  0x3d   :  { %v508_v23 = vpack.c.bf16 %v106_v21, %v104_v20 }
  0x3f   :  { %475 = vmatpush1.bf16.msra.mxu0 %v474_v37 }
  0x40   :  { %477 = vmatprep.subr.bf16.mxu0 %v476_v38 }
  0x43   :  { %479 = vmatpush1.bf16.msra.mxu0 %v749_v44  ;;  %531 = vmatpush1.bf16.xpose.msra.mxu1 %v466_v25  ;;  %v105_v25 = vld [vmem:[#allocation5 + $0x1d0] sm:$0xff] }
  0x44   :  { %481 = vmatprep.subr.bf16.mxu0 %v751_v45  ;;  %533 = vmatprep.subr.bf16.mxu1 %v468_v26  ;;  %v108_v26 = vld [vmem:[#allocation5 + $0x1e8] sm:$0xff]  ;;  %v510_v28 = vpack.c.bf16 %v105_v25, %v103_v24 }
  0x45   :  { %v512_v29 = vpack.c.bf16 %v110_v27, %v108_v26 }
  0x47   :  { %483 = vmatpush1.bf16.msra.mxu0 %v754_v50 }
  0x48   :  { %485 = vmatprep.subr.bf16.mxu0 %v757_v51 }
  0x4b   :  { %487 = vmatpush1.bf16.msra.mxu0 %v760_v56  ;;  %535 = vmatpush1.bf16.xpose.msra.mxu1 %v470_v31  ;;  %v109_v31 = vld [vmem:[#allocation5 + $0x1f0] sm:$0xff] }
  0x4c   :  { %489 = vmatprep.subr.bf16.mxu0 %v763_v57  ;;  %537 = vmatprep.subr.bf16.mxu1 %v472_v32  ;;  %v514_v32 = vpack.c.bf16 %v109_v31, %v107_v30 }
  0x4f   :  { %491 = vmatpush1.bf16.msra.mxu0 %v490_v62 }
  0x50   :  { %493 = vmatprep.subr.bf16.mxu0 %v492_v63 }
  0x53   :  { %495 = vmatpush1.bf16.msra.mxu0 %v494_v4  ;;  %539 = vmatpush1.bf16.xpose.msra.mxu1 %v474_v37  ;;  %v111_v37 = vld [vmem:[%s853_s2] sm:$0x3]  ;;  %s686_s2 = smov [#allocation8]  }
  0x54   :  { %497 = vmatprep.subr.bf16.mxu0 %v496_v5  ;;  %541 = vmatprep.subr.bf16.mxu1 %v476_v38  ;;  %v122_v38 = vsub.s32 1, %v773_v35  ;;  %v119_v39 = vrot.slane %v111_v37, %v118_v36  ;;  %s438_s19 = sshll.u32 %s686_s2, 4  ;;  %s439_s19 = int_to_ptr.vmem [resolvable:$true] %s438_s19 }
  0x55   :  { %s630_s20 = scalar_lea.vmem %s439_s19, 256  ;;  %p635_p3 = scmp.lt.s32.totalorder %s439_s19, %s439_s19 }
  0x56   :  { %v123_v40 = vrot.slane %v111_v37, %v122_v38  ;;  %p631_p2 = scmp.ne.s32.totalorder %s439_s19, %s630_s20  ;;  %p636_p4 = scmp.lt.s32.totalorder %s630_s20, %s630_s20 }
  0x57   :  { %499 = vmatpush1.bf16.msra.mxu0 %v498_v10 }
  0x58   :  { %501 = vmatprep.subr.bf16.mxu0 %v500_v11  ;;  %p637_p5 = por %p636_p4, %p635_p3 }
  0x5a   :  { %p638_p6 = pnand %p637_p5, %p631_p2 }
  0x5b   :  { %503 = vmatpush1.bf16.msra.mxu0 %v502_v16  ;;  %543 = vmatpush1.bf16.xpose.msra.mxu1 %v749_v44 }
  0x5c   :  { %505 = vmatprep.subr.bf16.mxu0 %v504_v17  ;;  %545 = vmatprep.subr.bf16.mxu1 %v751_v45 }
  0x5f   :  { %507 = vmatpush1.bf16.msra.mxu0 %v506_v22 }
  0x60   :  { %509 = vmatprep.subr.bf16.mxu0 %v508_v23 }
  0x63   :  { %511 = vmatpush1.bf16.msra.mxu0 %v510_v28  ;;  %547 = vmatpush1.bf16.xpose.msra.mxu1 %v754_v50 }
  0x64   :  { %513 = vmatprep.subr.bf16.mxu0 %v512_v29  ;;  %549 = vmatprep.subr.bf16.mxu1 %v757_v51 }
  0x67   :  { %515 = vmatpush1.bf16.msra.mxu0 %v514_v32 }
  0x6a   :  { %191 = vmatmul.mubr.f32.vlgmr.msra.gmra.mrb[0].mxu0 %v113_v33 }
  0x6b   :  { %551 = vmatpush1.bf16.xpose.msra.mxu1 %v760_v56 }
  0x6c   :  { %553 = vmatprep.subr.bf16.mxu1 %v763_v57 }
  0x73   :  { %555 = vmatpush1.bf16.xpose.msra.mxu1 %v490_v62 }
  0x74   :  { %557 = vmatprep.subr.bf16.mxu1 %v492_v63 }
  0x7b   :  { %559 = vmatpush1.bf16.xpose.msra.mxu1 %v494_v4 }
  0x7c   :  { %561 = vmatprep.subr.bf16.mxu1 %v496_v5 }
  0x83   :  { %563 = vmatpush1.bf16.xpose.msra.mxu1 %v498_v10 }
  0x84   :  { %565 = vmatprep.subr.bf16.mxu1 %v500_v11 }
  0x8b   :  { %567 = vmatpush1.bf16.xpose.msra.mxu1 %v502_v16 }
  0x8c   :  { %569 = vmatprep.subr.bf16.mxu1 %v504_v17 }
  0x93   :  { %571 = vmatpush1.bf16.xpose.msra.mxu1 %v506_v22 }
  0x94   :  { %573 = vmatprep.subr.bf16.mxu1 %v508_v23 }
  0x9b   :  { %575 = vmatpush1.bf16.xpose.msra.mxu1 %v510_v28 }
  0x9c   :  { %577 = vmatprep.subr.bf16.mxu1 %v512_v29 }
  0xa3   :  { %579 = vmatpush1.bf16.xpose.msra.mxu1 %v514_v32 }
 0x13d   :  { %v192_v41 = vpop.f32.mrb[0].mxu0 }
 0x13e   :  { %v784_v42 = vadd.f32 %v192_v41, %v119_v39  ;;  %v194_v43 = vpop.f32.mrb[1].mxu0 }
 0x13f   :  { %v786_v44 = vadd.f32 %v194_v43, %v123_v40 }
 0x140   :  { %v201_v45 = vand.u32 2147483647, %v784_v42 }
 0x141   :  { %v202_v46 = vand.u32 2147483647, %v786_v44 }
 0x143   :  { %v203_v47 = vmax.f32 %v201_v45, %v202_v46 }
 0x145   :  { %204 = vmax.xlane.f32.xlu0 %v203_v47 }
 0x1d2   :  { %v205_v48 = vpop.xlane.xlu0 %204 }
 0x1d3   :  { %vm206_vm0 = vcmp.eq.f32.partialorder %v201_v45, %v205_v48  ;;  %vm207_vm1 = vcmp.eq.f32.partialorder %v202_v46, %v205_v48 }
 0x1d4   :  { %v210_v49 = vsel %vm206_vm0, -1.0, %v201_v45  ;;  %v211_v50 = vsel %vm207_vm1, -1.0, %v202_v46  ;;  %v208_v53 = vsel %vm206_vm0, %v784_v42, 0.0  ;;  %v209_v54 = vsel %vm207_vm1, %v786_v44, 0.0 }
 0x1d5   :  { %v212_v51 = vmax.f32 %v210_v49, %v211_v50 }
 0x1d7   :  { %213 = vmax.xlane.f32.xlu0 %v212_v51 }
 0x264   :  { %v214_v52 = vpop.xlane.xlu0 %213 }
 0x265   :  { %vm215_vm2 = vcmp.eq.f32.partialorder %v210_v49, %v214_v52  ;;  %vm216_vm3 = vcmp.eq.f32.partialorder %v211_v50, %v214_v52 }
 0x266   :  { %v217_v55 = vsel %vm215_vm2, %v784_v42, %v208_v53  ;;  %v218_v56 = vsel %vm216_vm3, %v786_v44, %v209_v54  ;;  %v219_v57 = vsel %vm215_vm2, -1.0, %v210_v49  ;;  %v220_v58 = vsel %vm216_vm3, -1.0, %v211_v50 }
 0x267   :  { %v221_v59 = vmax.f32 %v219_v57, %v220_v58 }
 0x269   :  { %222 = vmax.xlane.f32.xlu1 %v221_v59 }
 0x2f6   :  { %v223_v60 = vpop.xlane.xlu1 %222 }
 0x2f7   :  { %vm224_vm4 = vcmp.eq.f32.partialorder %v219_v57, %v223_v60  ;;  %vm225_vm5 = vcmp.eq.f32.partialorder %v220_v58, %v223_v60 }
 0x2f8   :  { %v226_v61 = vsel %vm224_vm4, %v784_v42, %v217_v55  ;;  %v227_v62 = vsel %vm225_vm5, %v786_v44, %v218_v56  ;;  %v228_v63 = vsel %vm224_vm4, -1.0, %v219_v57  ;;  %v229_v0 = vsel %vm225_vm5, -1.0, %v220_v58 }
 0x2f9   :  { %v230_v1 = vmax.f32 %v228_v63, %v229_v0 }
 0x2fb   :  { %231 = vmax.xlane.f32.xlu1 %v230_v1 }
 0x388   :  { %v232_v2 = vpop.xlane.xlu1 %231 }
 0x389   :  { %vm233_vm6 = vcmp.eq.f32.partialorder %v228_v63, %v232_v2  ;;  %vm234_vm7 = vcmp.eq.f32.partialorder %v229_v0, %v232_v2 }
 0x38a   :  { %v235_v3 = vsel %vm233_vm6, %v784_v42, %v226_v61  ;;  %v236_v4 = vsel %vm234_vm7, %v786_v44, %v227_v62  ;;  %v237_v5 = vsel %vm233_vm6, -1.0, %v228_v63  ;;  %v238_v6 = vsel %vm234_vm7, -1.0, %v229_v0 }
 0x38b   :  { %v239_v7 = vmax.f32 %v237_v5, %v238_v6 }
 0x38d   :  { %240 = vmax.xlane.f32.xlu0 %v239_v7 }
 0x41a   :  { %v241_v8 = vpop.xlane.xlu0 %240 }
 0x41b   :  { %vm242_vm8 = vcmp.eq.f32.partialorder %v237_v5, %v241_v8  ;;  %vm243_vm9 = vcmp.eq.f32.partialorder %v238_v6, %v241_v8 }
 0x41c   :  { %v244_v9 = vsel %vm242_vm8, %v784_v42, %v235_v3  ;;  %v245_v10 = vsel %vm243_vm9, %v786_v44, %v236_v4  ;;  %v246_v11 = vsel %vm242_vm8, -1.0, %v237_v5  ;;  %v247_v12 = vsel %vm243_vm9, -1.0, %v238_v6 }
 0x41d   :  { %v248_v13 = vmax.f32 %v246_v11, %v247_v12 }
 0x41f   :  { %249 = vmax.xlane.f32.xlu1 %v248_v13 }
 0x4ac   :  { %v250_v14 = vpop.xlane.xlu1 %249 }
 0x4ad   :  { %vm251_vm10 = vcmp.eq.f32.partialorder %v246_v11, %v250_v14  ;;  %vm252_vm11 = vcmp.eq.f32.partialorder %v247_v12, %v250_v14 }
 0x4ae   :  { %v253_v15 = vsel %vm251_vm10, %v784_v42, %v244_v9  ;;  %v254_v16 = vsel %vm252_vm11, %v786_v44, %v245_v10  ;;  %v255_v17 = vsel %vm251_vm10, -1.0, %v246_v11  ;;  %v256_v18 = vsel %vm252_vm11, -1.0, %v247_v12 }
 0x4af   :  { %v257_v19 = vmax.f32 %v255_v17, %v256_v18 }
 0x4b1   :  { %258 = vmax.xlane.f32.xlu0 %v257_v19 }
 0x53e   :  { %v259_v20 = vpop.xlane.xlu0 %258 }
 0x53f   :  { %vm260_vm12 = vcmp.eq.f32.partialorder %v255_v17, %v259_v20  ;;  %vm261_vm13 = vcmp.eq.f32.partialorder %v256_v18, %v259_v20 }
 0x540   :  { %v262_v21 = vsel %vm260_vm12, %v784_v42, %v253_v15  ;;  %v263_v22 = vsel %vm261_vm13, %v786_v44, %v254_v16  ;;  %v264_v23 = vsel %vm260_vm12, -1.0, %v255_v17  ;;  %v265_v24 = vsel %vm261_vm13, -1.0, %v256_v18 }
 0x541   :  { %v266_v25 = vmax.f32 %v264_v23, %v265_v24 }
 0x543   :  { %267 = vmax.xlane.f32.xlu1 %v266_v25 }
 0x5d0   :  { %v268_v26 = vpop.xlane.xlu1 %267 }
 0x5d1   :  { %vm269_vm14 = vcmp.eq.f32.partialorder %v264_v23, %v268_v26  ;;  %vm270_vm15 = vcmp.eq.f32.partialorder %v265_v24, %v268_v26 }
 0x5d2   :  { %v271_v27 = vsel %vm269_vm14, %v784_v42, %v262_v21  ;;  %v272_v28 = vsel %vm270_vm15, %v786_v44, %v263_v22  ;;  %v273_v29 = vsel %vm269_vm14, -1.0, %v264_v23  ;;  %v274_v30 = vsel %vm270_vm15, -1.0, %v265_v24 }
 0x5d3   :  { %v275_v31 = vmax.f32 %v273_v29, %v274_v30 }
 0x5d5   :  { %276 = vmax.xlane.f32.xlu0 %v275_v31 }
 0x662   :  { %v277_v32 = vpop.xlane.xlu0 %276 }
 0x663   :  { %vm278_vm0 = vcmp.eq.f32.partialorder %v273_v29, %v277_v32  ;;  %vm279_vm1 = vcmp.eq.f32.partialorder %v274_v30, %v277_v32 }
 0x664   :  { %v280_v33 = vsel %vm278_vm0, %v784_v42, %v271_v27  ;;  %v281_v34 = vsel %vm279_vm1, %v786_v44, %v272_v28  ;;  %v282_v37 = vsel %vm278_vm0, -1.0, %v273_v29  ;;  %v283_v39 = vsel %vm279_vm1, -1.0, %v274_v30 }
 0x665   :  { %v284_v40 = vmax.f32 %v282_v37, %v283_v39 }
 0x667   :  { %285 = vmax.xlane.f32.xlu1 %v284_v40 }
 0x6f4   :  { %v286_v41 = vpop.xlane.xlu1 %285 }
 0x6f5   :  { %vm287_vm2 = vcmp.eq.f32.partialorder %v282_v37, %v286_v41  ;;  %vm288_vm3 = vcmp.eq.f32.partialorder %v283_v39, %v286_v41 }
 0x6f6   :  { %v289_v43 = vsel %vm287_vm2, %v784_v42, %v280_v33  ;;  %v290_v45 = vsel %vm288_vm3, %v786_v44, %v281_v34  ;;  %v291_v46 = vsel %vm287_vm2, -1.0, %v282_v37  ;;  %v292_v47 = vsel %vm288_vm3, -1.0, %v283_v39 }
 0x6f7   :  { %v293_v48 = vmax.f32 %v291_v46, %v292_v47 }
 0x6f9   :  { %294 = vmax.xlane.f32.xlu0 %v293_v48 }
 0x786   :  { %v295_v49 = vpop.xlane.xlu0 %294 }
 0x787   :  { %vm296_vm4 = vcmp.eq.f32.partialorder %v291_v46, %v295_v49  ;;  %vm297_vm5 = vcmp.eq.f32.partialorder %v292_v47, %v295_v49 }
 0x788   :  { %v298_v50 = vsel %vm296_vm4, %v784_v42, %v289_v43  ;;  %v299_v51 = vsel %vm297_vm5, %v786_v44, %v290_v45  ;;  %v300_v52 = vsel %vm296_vm4, -1.0, %v291_v46  ;;  %v301_v53 = vsel %vm297_vm5, -1.0, %v292_v47 }
 0x789   :  { %v302_v54 = vmax.f32 %v300_v52, %v301_v53 }
 0x78b   :  { %303 = vmax.xlane.f32.xlu1 %v302_v54 }
 0x818   :  { %v304_v55 = vpop.xlane.xlu1 %303 }
 0x819   :  { %vm305_vm6 = vcmp.eq.f32.partialorder %v300_v52, %v304_v55  ;;  %vm306_vm7 = vcmp.eq.f32.partialorder %v301_v53, %v304_v55 }
 0x81a   :  { %v307_v56 = vsel %vm305_vm6, %v784_v42, %v298_v50  ;;  %v308_v57 = vsel %vm306_vm7, %v786_v44, %v299_v51  ;;  %v309_v58 = vsel %vm305_vm6, -1.0, %v300_v52  ;;  %v310_v59 = vsel %vm306_vm7, -1.0, %v301_v53 }
 0x81b   :  { %v311_v60 = vmax.f32 %v309_v58, %v310_v59 }
 0x81d   :  { %312 = vmax.xlane.f32.xlu0 %v311_v60 }
 0x8aa   :  { %v313_v61 = vpop.xlane.xlu0 %312 }
 0x8ab   :  { %vm314_vm8 = vcmp.eq.f32.partialorder %v309_v58, %v313_v61  ;;  %vm315_vm9 = vcmp.eq.f32.partialorder %v310_v59, %v313_v61 }
 0x8ac   :  { %v316_v62 = vsel %vm314_vm8, %v784_v42, %v307_v56  ;;  %v317_v63 = vsel %vm315_vm9, %v786_v44, %v308_v57  ;;  %v318_v0 = vsel %vm314_vm8, -1.0, %v309_v58  ;;  %v319_v1 = vsel %vm315_vm9, -1.0, %v310_v59 }
 0x8ad   :  { %v320_v2 = vmax.f32 %v318_v0, %v319_v1 }
 0x8af   :  { %321 = vmax.xlane.f32.xlu1 %v320_v2 }
 0x93c   :  { %v322_v3 = vpop.xlane.xlu1 %321 }
 0x93d   :  { %vm323_vm10 = vcmp.eq.f32.partialorder %v318_v0, %v322_v3  ;;  %vm324_vm11 = vcmp.eq.f32.partialorder %v319_v1, %v322_v3 }
 0x93e   :  { %v325_v4 = vsel %vm323_vm10, %v784_v42, %v316_v62  ;;  %v327_v5 = vsel %vm323_vm10, -1.0, %v318_v0  ;;  %v328_v6 = vsel %vm324_vm11, -1.0, %v319_v1  ;;  %v326_v7 = vsel %vm324_vm11, %v786_v44, %v317_v63 }
 0x93f   :  { %v329_v8 = vmax.f32 %v327_v5, %v328_v6 }
 0x941   :  { %330 = vmax.xlane.f32.xlu0 %v329_v8 }
 0x9ce   :  { %v331_v9 = vpop.xlane.xlu0 %330 }
 0x9cf   :  { %vm332_vm12 = vcmp.eq.f32.partialorder %v327_v5, %v331_v9  ;;  %vm333_vm13 = vcmp.eq.f32.partialorder %v328_v6, %v331_v9 }
 0x9d0   :  { %v335_v10 = vsel %vm333_vm13, %v786_v44, %v326_v7  ;;  %v334_v11 = vsel %vm332_vm12, %v784_v42, %v325_v4 }
 0x9d1   :  { %413 = vmatprep.mubr.f32.mxu1 %v335_v10  ;;  %337 = vst [vmem:[#allocation8 + $0x8] sm:$0xff] %v335_v10  ;;  %336 = vst [vmem:[#allocation8] sm:$0xff] %v334_v11 }
 0x9d2   :  { %414 = vmatmul.mubr.f32.vlgmr.msra.gmra.mrb[0].mxu1 %v334_v11 }
 0x9d3   :  { %641 = shalt.err (!%p638_p6)
}
 0x9d4   :  { %s642_s23 = scalar_lea.hbm %s856_s5, 256 }
 0x9d5   :  { %p643_p7 = scmp.ne.s32.totalorder %s856_s5, %s642_s23  ;;  %p646_p8 = scmp.lt.u32.totalorder %s642_s23, %s856_s5 }
 0x9d7   :  { %p648_p9 = pnand %p646_p8, %p643_p7 }
 0x9d9   :  { %651 = shalt.err (!%p648_p9)
}
 0x9da   :  { %441 = dma.vmem_to_hbm [thread:$0]  %s439_s19, 256, %s856_s5, [#allocation9]   ;;  %v112_v42 = vld [vmem:[%s854_s3] sm:$0x3] }
 0x9db   :  { %v342_v44 = vrot.slane %v112_v42, %v118_v36  ;;  %v346_v12 = vrot.slane %v112_v42, %v122_v38  ;;  %s687_s7 = smov [#allocation7]  }
 0x9dc   :  { %s428_s8 = sshll.u32 %s687_s7, 4  ;;  %s429_s8 = int_to_ptr.vmem [resolvable:$true] %s428_s8 }
 0x9dd   :  { %s652_s5 = scalar_lea.vmem %s429_s8, 256  ;;  %p657_p11 = scmp.lt.s32.totalorder %s429_s8, %s429_s8 }
 0x9de   :  { %p653_p10 = scmp.ne.s32.totalorder %s429_s8, %s652_s5  ;;  %p658_p12 = scmp.lt.s32.totalorder %s652_s5, %s652_s5 }
 0x9e0   :  { %p659_p13 = por %p658_p12, %p657_p11 }
 0x9e2   :  { %p660_p0 = pnand %p659_p13, %p653_p10 }
 0xaa5   :  { %v415_v13 = vpop.f32.mrb[0].mxu1 }
 0xaa6   :  { %v416_v14 = vadd.f32 %v415_v13, %v342_v44  ;;  %v417_v15 = vpop.f32.mrb[1].mxu1 }
 0xaa7   :  { %v418_v16 = vadd.f32 %v417_v15, %v346_v12 }
 0xaa8   :  { %420 = vst [vmem:[#allocation7] sm:$0xff] %v416_v14 }
 0xaa9   :  { %421 = vst [vmem:[#allocation7 + $0x8] sm:$0xff] %v418_v16 }
 0xaaa   :  { %663 = shalt.err (!%p660_p0)
}
 0xaab   :  { %s664_s10 = scalar_lea.hbm %s855_s4, 256 }
 0xaac   :  { %p665_p1 = scmp.ne.s32.totalorder %s855_s4, %s664_s10  ;;  %p668_p2 = scmp.lt.u32.totalorder %s664_s10, %s855_s4 }
 0xaae   :  { %p670_p3 = pnand %p668_p2, %p665_p1 }
 0xab0   :  { %673 = shalt.err (!%p670_p3)
}
 0xab1   :  { %431 = dma.vmem_to_hbm [thread:$0]  %s429_s8, 256, %s855_s4, [#allocation4]  }
 0xab2   :  { %678 = dma.done.wait [#allocation4], 256  }
 0xab3   :  { %679 = vsyncadd [#allocation4], 4294967040 }
 0xab4   :  { %680 = dma.done.wait [#allocation9], 256  }
 0xab5   :  { %681 = vsyncadd [#allocation9], 4294967040 }
 0xab6   :  { %448 = vsyncpa [#allocation3], 1 }
 0xab7   :  { %449 = vsyncpa [#allocation6], 1 }
 0xab8   :  { %450 = vsyncpa [#allocation4], 1 }
 0xab9   :  { %451 = vsyncpa [#allocation9], 1 }

</bundles_post_ra>
